<compile_context>
chip_gen: v7x
topology: tpu7x:2x2x1
jax: 0.10.0
libtpu: 0.0.40
codegen_flags: <defaults>
</compile_context>

<pallas_src>
import math

import jax
import jax.numpy as jnp
from jax.experimental import pallas as pl
from jax.experimental.pallas import tpu as pltpu


def _column_chunks(n_cols, n_rows, itemsize, *, max_chunks=8, min_bytes=1 << 20):
    """Split `n_cols` into static (start, size) chunks of roughly >= min_bytes.

    Multiple in-flight DMAs help saturate HBM bandwidth on large copies; tiny
    copies stay as a single descriptor.  Chunk boundaries are rounded up to
    multiples of 128 elements (one lane row) when possible.
    """
    total_bytes = n_cols * n_rows * itemsize
    k = max(1, min(max_chunks, total_bytes // min_bytes))
    k = int(min(k, n_cols))
    chunk = -(-n_cols // k)                       # ceil div
    if n_cols >= 128 and chunk % 128:
        chunk = -(-chunk // 128) * 128            # align chunks to 128 lanes
    bounds = []
    lo = 0
    while lo < n_cols:
        sz = min(chunk, n_cols - lo)
        bounds.append((lo, sz))
        lo += sz
    return bounds


def _make_concat_kernel(c1_flat, x_chunks, rhs_chunks):
    """Builds a kernel that DMAs x/rhs directly into the output (all in HBM)."""
    n_x = len(x_chunks)

    def kernel(x_hbm, rhs_hbm, o_hbm, sem):
        copies = []
        # x -> out[:, :c1_flat]   (all starts/sizes are static Python ints)
        for i, (lo, sz) in enumerate(x_chunks):
            cp = pltpu.make_async_copy(
                x_hbm.at[:, pl.ds(lo, sz)],
                o_hbm.at[:, pl.ds(lo, sz)],
                sem.at[i],
            )
            cp.start()
            copies.append(cp)
        # rhs -> out[:, c1_flat:]
        for j, (lo, sz) in enumerate(rhs_chunks):
            cp = pltpu.make_async_copy(
                rhs_hbm.at[:, pl.ds(lo, sz)],
                o_hbm.at[:, pl.ds(c1_flat + lo, sz)],
                sem.at[n_x + j],
            )
            cp.start()
            copies.append(cp)
        # All DMAs overlap; wait for every one before returning.
        for cp in copies:
            cp.wait()

    return kernel


def concat_dim1(x, rhs):
    """Equivalent of torch.cat((x, rhs), dim=1) for tensors with ndim >= 2."""
    assert x.ndim == rhs.ndim and x.ndim >= 2
    assert x.shape[0] == rhs.shape[0], "dim 0 must match"
    assert x.shape[2:] == rhs.shape[2:], "dims after dim 1 must match"
    assert x.dtype == rhs.dtype

    n = x.shape[0]
    c1, c2 = x.shape[1], rhs.shape[1]
    rest = int(math.prod(x.shape[2:]))
    c1_flat, c2_flat = c1 * rest, c2 * rest
    out_cols = c1_flat + c2_flat

    # Flatten to 2-D: each DMA becomes a strided row copy with a long,
    # lane-dense contiguous inner dimension (no NCHW W=16 lane sparsity).
    x2d = x.reshape(n, c1_flat)
    rhs2d = rhs.reshape(n, c2_flat)

    itemsize = jnp.dtype(x.dtype).itemsize
    x_chunks = _column_chunks(c1_flat, n, itemsize)
    rhs_chunks = _column_chunks(c2_flat, n, itemsize)
    n_dmas = len(x_chunks) + len(rhs_chunks)

    kernel = _make_concat_kernel(c1_flat, x_chunks, rhs_chunks)

    out2d = pl.pallas_call(
        kernel,
        out_shape=jax.ShapeDtypeStruct((n, out_cols), x.dtype),
        in_specs=[
            pl.BlockSpec(memory_space=pl.ANY),       # x stays in HBM
            pl.BlockSpec(memory_space=pl.ANY),       # rhs stays in HBM
        ],
        out_specs=pl.BlockSpec(memory_space=pl.ANY),  # written via DMA only
        scratch_shapes=[pltpu.SemaphoreType.DMA((n_dmas,))],
    )(x2d, rhs2d)

    return out2d.reshape((n, c1 + c2) + x.shape[2:])


if __name__ == "__main__":
    key = jax.random.PRNGKey(0)
    k1, k2 = jax.random.split(key)

    # Small NCHW shapes: concat along channels (dim=1).
    x = jax.random.normal(k1, (2, 4, 16, 16), dtype=jnp.float32)
    rhs = jax.random.normal(k2, (2, 6, 16, 16), dtype=jnp.float32)

    out = concat_dim1(x, rhs)
    out = jax.block_until_ready(out)

    # Verify against plain JAX reference (torch.cat semantics).
    ref = jnp.concatenate((x, rhs), axis=1)
    assert out.shape == (2, 10, 16, 16)
    assert out.dtype == x.dtype
    assert jnp.array_equal(out, ref)

    print("KERNEL_OK")
</pallas_src>

<mosaic_0001>
module attributes {stable_mosaic.version = 11 : i64} {
  func.func @kernel(%arg0: memref<2x1024xf32, #tpu.memory_space<any>>, %arg1: memref<2x1536xf32, #tpu.memory_space<any>>, %arg2: memref<2x2560xf32, #tpu.memory_space<any>>, %arg3: memref<2x!tpu.dma_semaphore, #tpu.memory_space<semaphore_mem>>) attributes {dimension_semantics = [], scalar_prefetch = 0 : i64, scratch_operands = 1 : i64, tpu.core_type = #tpu.core_type<tc>} {
    %c0_i32 = arith.constant 0 : i32
    %c0_i32_0 = arith.constant 0 : i32
    %c0_i32_1 = arith.constant 0 : i32
    %0 = tpu.memref_slice %arg0[%c0_i32_0, %c0_i32_1] : memref<2x1024xf32, #tpu.memory_space<any>> -> memref<2x1024xf32, #tpu.memory_space<any>>
    %c0_i32_2 = arith.constant 0 : i32
    %c0_i32_3 = arith.constant 0 : i32
    %1 = tpu.memref_slice %arg2[%c0_i32_2, %c0_i32_3] : memref<2x2560xf32, #tpu.memory_space<any>> -> memref<2x1024xf32, #tpu.memory_space<any>>
    %2 = tpu.memref_slice %arg3[%c0_i32] : memref<2x!tpu.dma_semaphore, #tpu.memory_space<semaphore_mem>> -> memref<1x!tpu.dma_semaphore, #tpu.memory_space<semaphore_mem>>
    %3 = tpu.memref_squeeze %2 : memref<1x!tpu.dma_semaphore, #tpu.memory_space<semaphore_mem>> -> memref<!tpu.dma_semaphore, #tpu.memory_space<semaphore_mem>>
    tpu.enqueue_dma source(%0 : memref<2x1024xf32, #tpu.memory_space<any>>) target(%1 : memref<2x1024xf32, #tpu.memory_space<any>>) target_semaphore(%3 : memref<!tpu.dma_semaphore, #tpu.memory_space<semaphore_mem>>)
    %c1_i32 = arith.constant 1 : i32
    %c0_i32_4 = arith.constant 0 : i32
    %c0_i32_5 = arith.constant 0 : i32
    %4 = tpu.memref_slice %arg1[%c0_i32_4, %c0_i32_5] : memref<2x1536xf32, #tpu.memory_space<any>> -> memref<2x1536xf32, #tpu.memory_space<any>>
    %c0_i32_6 = arith.constant 0 : i32
    %c1024_i32 = arith.constant 1024 : i32
    %5 = tpu.memref_slice %arg2[%c0_i32_6, %c1024_i32] : memref<2x2560xf32, #tpu.memory_space<any>> -> memref<2x1536xf32, #tpu.memory_space<any>>
    %6 = tpu.memref_slice %arg3[%c1_i32] : memref<2x!tpu.dma_semaphore, #tpu.memory_space<semaphore_mem>> -> memref<1x!tpu.dma_semaphore, #tpu.memory_space<semaphore_mem>>
    %7 = tpu.memref_squeeze %6 : memref<1x!tpu.dma_semaphore, #tpu.memory_space<semaphore_mem>> -> memref<!tpu.dma_semaphore, #tpu.memory_space<semaphore_mem>>
    tpu.enqueue_dma source(%4 : memref<2x1536xf32, #tpu.memory_space<any>>) target(%5 : memref<2x1536xf32, #tpu.memory_space<any>>) target_semaphore(%7 : memref<!tpu.dma_semaphore, #tpu.memory_space<semaphore_mem>>)
    %c0_i32_7 = arith.constant 0 : i32
    %c0_i32_8 = arith.constant 0 : i32
    %c0_i32_9 = arith.constant 0 : i32
    %8 = tpu.memref_slice %arg0[%c0_i32_8, %c0_i32_9] : memref<2x1024xf32, #tpu.memory_space<any>> -> memref<2x1024xf32, #tpu.memory_space<any>>
    %c0_i32_10 = arith.constant 0 : i32
    %c0_i32_11 = arith.constant 0 : i32
    %9 = tpu.memref_slice %arg2[%c0_i32_10, %c0_i32_11] : memref<2x2560xf32, #tpu.memory_space<any>> -> memref<2x1024xf32, #tpu.memory_space<any>>
    %10 = tpu.memref_slice %arg3[%c0_i32_7] : memref<2x!tpu.dma_semaphore, #tpu.memory_space<semaphore_mem>> -> memref<1x!tpu.dma_semaphore, #tpu.memory_space<semaphore_mem>>
    %11 = tpu.memref_squeeze %10 : memref<1x!tpu.dma_semaphore, #tpu.memory_space<semaphore_mem>> -> memref<!tpu.dma_semaphore, #tpu.memory_space<semaphore_mem>>
    tpu.wait_dma2 semaphore(%11 : memref<!tpu.dma_semaphore, #tpu.memory_space<semaphore_mem>>) src(%8 : memref<2x1024xf32, #tpu.memory_space<any>>) dst(%9 : memref<2x1024xf32, #tpu.memory_space<any>>)
    %c1_i32_12 = arith.constant 1 : i32
    %c0_i32_13 = arith.constant 0 : i32
    %c0_i32_14 = arith.constant 0 : i32
    %12 = tpu.memref_slice %arg1[%c0_i32_13, %c0_i32_14] : memref<2x1536xf32, #tpu.memory_space<any>> -> memref<2x1536xf32, #tpu.memory_space<any>>
    %c0_i32_15 = arith.constant 0 : i32
    %c1024_i32_16 = arith.constant 1024 : i32
    %13 = tpu.memref_slice %arg2[%c0_i32_15, %c1024_i32_16] : memref<2x2560xf32, #tpu.memory_space<any>> -> memref<2x1536xf32, #tpu.memory_space<any>>
    %14 = tpu.memref_slice %arg3[%c1_i32_12] : memref<2x!tpu.dma_semaphore, #tpu.memory_space<semaphore_mem>> -> memref<1x!tpu.dma_semaphore, #tpu.memory_space<semaphore_mem>>
    %15 = tpu.memref_squeeze %14 : memref<1x!tpu.dma_semaphore, #tpu.memory_space<semaphore_mem>> -> memref<!tpu.dma_semaphore, #tpu.memory_space<semaphore_mem>>
    tpu.wait_dma2 semaphore(%15 : memref<!tpu.dma_semaphore, #tpu.memory_space<semaphore_mem>>) src(%12 : memref<2x1536xf32, #tpu.memory_space<any>>) dst(%13 : memref<2x1536xf32, #tpu.memory_space<any>>)
    return
  }
}

</mosaic_0001>

<bundles_post_ra>
// kernel: tpu_custom_call.1
= control target key start
LH: loop header
LB: loop body
LE: loop exit
PB: predicated region body
PF: predicated region fallthrough
CT: control target
= control target key end

     0   :  { %s66_s12 = smov [#allocation2]   ;;  %s67_s13 = smov [#allocation3]   ;;  %s98_s0 = inlined_call_operand.hbm [shape: f32[2,1024], index: 0, kind: input, shape index: {}]   ;;  %s99_s2 = inlined_call_operand.hbm [shape: f32[2,2560], index: 2, kind: output, shape index: {}]   ;;  %s100_s1 = inlined_call_operand.hbm [shape: f32[2,1536], index: 1, kind: input, shape index: {}]  }
   0x1   :  { %s20_s11 = scalar_lea.hbm %s99_s2, 256  ;;  %s68_s14 = smov 0  }
   0x2   :  { %19 = dma.general %s98_s0, 256, %s99_s2, %s66_s12, %s67_s13, [#allocation4], %s68_s14, 0  }
   0x3   :  { %s69_s19 = smov [#allocation2 + $0x1]   ;;  %s70_s20 = smov [#allocation5]  }
   0x4   :  { %34 = dma.general %s100_s1, 384, %s20_s11, %s69_s19, %s70_s20, [#allocation6], %s68_s14, 0  }
   0x5   :  { %62 = dma.done.wait [#allocation2], 256 }
   0x6   :  { %63 = vsyncadd [#allocation2], 4294967040 }
   0x7   :  { %64 = dma.done.wait [#allocation2 + $0x1], 384 }
   0x8   :  { %65 = vsyncadd [#allocation2 + $0x1], 4294966912 }
   0x9   :  { %42 = vsyncmov [#allocation2] }
   0xc   :  { %s43_s23 = vpop.sfrf %42 }
   0xd   :  { %p55_p0 = scmp.ne.s32.totalorder %s43_s23, 0 }
   0xf   :  { %47 = shalt.err (%p55_p0)  }
  0x10   :  { %49 = vsyncmov [#allocation2 + $0x1] }
  0x13   :  { %s50_s24 = vpop.sfrf %49 }
  0x14   :  { %p56_p1 = scmp.ne.s32.totalorder %s50_s24, 0 }
  0x16   :  { %54 = shalt.err (%p56_p1)  }

</bundles_post_ra>
